<compile_context>
chip_gen: v7x
topology: tpu7x:2x2x1
jax: 0.10.0
libtpu: 0.0.40
codegen_flags: <defaults>
</compile_context>

<pallas_src>
import math
import functools

import jax
import jax.numpy as jnp
from jax import lax
from jax.experimental import pallas as pl
from jax.experimental.pallas import tpu as pltpu

LANE = 128


def _round_up(x, m):
    return ((x + m - 1) // m) * m


def _self_attention_kernel(x_ref, wqkv_ref, bqkv_ref, lens_ref, max_len_ref, o_ref,
                           *, hidden_dim, hp):
    """Fused: one QKV projection -> scaled scores -> length mask -> softmax -> P@V."""
    x = x_ref[...]                                               # (N, D) bf16

    # Single wide MXU matmul for Q|K|V (bf16 operands, f32 accumulation), then bias.
    z = jnp.dot(x, wqkv_ref[...], preferred_element_type=jnp.float32) + bqkv_ref[...]
    q = z[:, :hp]                                                # (N, Hp) f32
    k = z[:, hp:2 * hp]                                          # (N, Hp) f32
    v = z[:, 2 * hp:]                                            # (N, Op) f32

    # Fold the 1/sqrt(hidden_dim) score scale into q: O(N*H) instead of O(N^2).
    q = q * jnp.float32(1.0 / math.sqrt(hidden_dim))

    # Scores via dot_general contracting the feature axis of both operands — no k.T
    # (padded columns of q/k are exactly zero, so they contribute nothing).
    scores = lax.dot_general(
        q.astype(jnp.bfloat16), k.astype(jnp.bfloat16),
        (((1,), (1,)), ((), ())),
        preferred_element_type=jnp.float32)                      # (N, N) f32

    # Length masking — PyTorch semantics: only rows i with seq_lens[i] < max(seq_lens)
    # get columns [seq_lens[i]:] set to -1e9. max_len comes from SMEM (scalar path).
    lens = lens_ref[...]                                         # (N, 1) int32
    max_len = max_len_ref[0]                                     # scalar int32 (SMEM)
    col_idx = lax.broadcasted_iota(jnp.int32, scores.shape, 1)   # (N, N) column indices
    mask = jnp.logical_and(lens < max_len, col_idx >= lens)      # (N, N) bool
    scores = jnp.where(mask, jnp.float32(-1000000000.0), scores)

    # Numerically-stable softmax, all in f32 (keep VPU/EUP math in f32 for v5e).
    m = jnp.max(scores, axis=-1, keepdims=True)
    e = jnp.exp(scores - m)
    denom = jnp.sum(e, axis=-1, keepdims=True)
    p = e * pl.reciprocal(denom, approx=True)                    # EUP vrcp — free slot

    # Attention-weighted values: bf16 MXU operands, f32 accumulation; lane-dense store.
    o_ref[...] = lax.dot_general(
        p.astype(jnp.bfloat16), v.astype(jnp.bfloat16),
        (((1,), (0,)), ((), ())),
        preferred_element_type=jnp.float32)                      # (N, Op) f32


@functools.partial(jax.jit, static_argnames=("hidden_dim",))
def self_attention(x, wq, bq, wk, bk, wv, bv, seq_lens, *, hidden_dim):
    """x: (N, D) f32; w*: (in, out) f32; b*: (1, out) f32; seq_lens: (N, 1) i32."""
    n, _ = x.shape
    h = wq.shape[1]
    o = wv.shape[1]
    hp = _round_up(h, LANE)   # lane-dense padded hidden width
    op = _round_up(o, LANE)   # lane-dense padded output width

    # Zero-pad projection widths to 128 multiples and fuse Q/K/V into one weight so
    # the kernel issues a single wide MXU matmul and an unmasked lane-dense store.
    def pad_cols(w, new_cols):
        return jnp.pad(w, ((0, 0), (0, new_cols - w.shape[-1])))

    wqkv = jnp.concatenate(
        [pad_cols(wq, hp), pad_cols(wk, hp), pad_cols(wv, op)], axis=1)
    bqkv = jnp.concatenate(
        [pad_cols(bq, hp), pad_cols(bk, hp), pad_cols(bv, op)], axis=1)

    # bf16 MXU operands (also halves the HBM->VMEM DMA bytes); biases stay f32.
    x_bf16 = x.astype(jnp.bfloat16)
    wqkv_bf16 = wqkv.astype(jnp.bfloat16)
    bqkv_f32 = bqkv.astype(jnp.float32)

    lens = seq_lens.reshape(n, 1).astype(jnp.int32)
    max_len = jnp.max(lens).reshape(1)     # scalar for the kernel's SMEM path

    full = lambda arr: pl.BlockSpec(arr.shape, lambda: (0,) * arr.ndim)

    kernel = functools.partial(_self_attention_kernel, hidden_dim=hidden_dim, hp=hp)
    out_padded = pl.pallas_call(
        kernel,
        out_shape=jax.ShapeDtypeStruct((n, op), jnp.float32),
        in_specs=[full(x_bf16), full(wqkv_bf16), full(bqkv_f32), full(lens),
                  pl.BlockSpec(memory_space=pltpu.MemorySpace.SMEM)],
        out_specs=pl.BlockSpec((n, op), lambda: (0, 0)),
        compiler_params=pltpu.CompilerParams(vmem_limit_bytes=16 * 1024 * 1024),
    )(x_bf16, wqkv_bf16, bqkv_f32, lens, max_len)

    # Slice the zero-padded output columns back to the logical output_dim.
    return out_padded[:, :o]


def init_params(key, input_dim, hidden_dim, output_dim):
    """Deterministic param init (PyTorch nn.Linear shapes, stored transposed)."""
    ks = jax.random.split(key, 6)
    scale_q = 1.0 / math.sqrt(input_dim)
    wq = jax.random.uniform(ks[0], (input_dim, hidden_dim), jnp.float32, -scale_q, scale_q)
    bq = jax.random.uniform(ks[1], (1, hidden_dim), jnp.float32, -scale_q, scale_q)
    wk = jax.random.uniform(ks[2], (input_dim, hidden_dim), jnp.float32, -scale_q, scale_q)
    bk = jax.random.uniform(ks[3], (1, hidden_dim), jnp.float32, -scale_q, scale_q)
    wv = jax.random.uniform(ks[4], (input_dim, output_dim), jnp.float32, -scale_q, scale_q)
    bv = jax.random.uniform(ks[5], (1, output_dim), jnp.float32, -scale_q, scale_q)
    return wq, bq, wk, bk, wv, bv


def reference(x, wq, bq, wk, bk, wv, bv, seq_lens, hidden_dim):
    """Pure-JAX f32 reference replicating the PyTorch forward (eval mode)."""
    q = x @ wq + bq
    k = x @ wk + bk
    v = x @ wv + bv
    s = (q @ k.T) / math.sqrt(hidden_dim)
    lens = seq_lens[:, 0]
    max_len = jnp.max(lens)
    col = jnp.arange(s.shape[1])[None, :]
    mask = (lens[:, None] < max_len) & (col >= lens[:, None])
    s = jnp.where(mask, -1000000000.0, s)
    p = jax.nn.softmax(s, axis=-1)
    return p @ v


if __name__ == "__main__":
    # Small shapes implied by the module: N tokens of dim input_dim.
    N, INPUT_DIM, HIDDEN_DIM, OUTPUT_DIM = 8, 32, 32, 32

    key = jax.random.PRNGKey(0)
    k_x, k_p = jax.random.split(key)

    x = jax.random.normal(k_x, (N, INPUT_DIM), dtype=jnp.float32)
    wq, bq, wk, bk, wv, bv = init_params(k_p, INPUT_DIM, HIDDEN_DIM, OUTPUT_DIM)
    # Per-row valid lengths (includes the max == N case and shorter rows).
    seq_lens = jnp.array([8, 5, 8, 3, 7, 8, 2, 6], dtype=jnp.int32).reshape(N, 1)

    out = self_attention(x, wq, bq, wk, bk, wv, bv, seq_lens, hidden_dim=HIDDEN_DIM)
    out = jax.block_until_ready(out)

    ref = reference(x, wq, bq, wk, bk, wv, bv, seq_lens, HIDDEN_DIM)
    assert out.shape == (N, OUTPUT_DIM)
    # Tolerance relaxed for bf16 MXU operands (f32 reference).
    assert jnp.allclose(out, ref, atol=2e-2, rtol=2e-2), "mismatch vs reference"

    print("KERNEL_OK")
</pallas_src>

<mosaic_0001>
module attributes {stable_mosaic.version = 11 : i64} {
  func.func @_self_attention_kernel(%arg0: memref<8x32xbf16, #tpu.memory_space<vmem>>, %arg1: memref<32x384xbf16, #tpu.memory_space<vmem>>, %arg2: memref<1x384xf32, #tpu.memory_space<vmem>>, %arg3: memref<8x1xi32, #tpu.memory_space<vmem>>, %arg4: memref<1xi32, #tpu.memory_space<smem>>, %arg5: memref<8x128xf32, #tpu.memory_space<vmem>>) attributes {dimension_semantics = [], scalar_prefetch = 0 : i64, scratch_operands = 0 : i64, tpu.core_type = #tpu.core_type<tc>} {
    %c0 = arith.constant 0 : index
    %c0_0 = arith.constant 0 : index
    %0 = vector.load %arg0[%c0, %c0_0] : memref<8x32xbf16, #tpu.memory_space<vmem>>, vector<8x32xbf16>
    %c0_1 = arith.constant 0 : index
    %c0_2 = arith.constant 0 : index
    %1 = vector.load %arg1[%c0_1, %c0_2] : memref<32x384xbf16, #tpu.memory_space<vmem>>, vector<32x384xbf16>
    %cst = arith.constant dense<0.000000e+00> : vector<8x384xf32>
    %2 = tpu.matmul %0, %1, %cst {dimension_numbers = #tpu.dot_dimension_numbers<[1], [0], [0], [1], [0, 0, 1, 1], [], []>} : vector<8x32xbf16>, vector<32x384xbf16>, vector<8x384xf32> -> vector<8x384xf32>
    %c0_3 = arith.constant 0 : index
    %c0_4 = arith.constant 0 : index
    %3 = vector.load %arg2[%c0_3, %c0_4] : memref<1x384xf32, #tpu.memory_space<vmem>>, vector<1x384xf32>
    %4 = vector.broadcast %3 : vector<1x384xf32> to vector<8x384xf32>
    %5 = arith.addf %2, %4 : vector<8x384xf32>
    %6 = vector.extract_strided_slice %5 {offsets = [0, 0], sizes = [8, 128], strides = [1, 1]} : vector<8x384xf32> to vector<8x128xf32>
    %7 = vector.extract_strided_slice %5 {offsets = [0, 128], sizes = [8, 128], strides = [1, 1]} : vector<8x384xf32> to vector<8x128xf32>
    %8 = vector.extract_strided_slice %5 {offsets = [0, 256], sizes = [8, 128], strides = [1, 1]} : vector<8x384xf32> to vector<8x128xf32>
    %cst_5 = arith.constant 0.176776692 : f32
    %9 = vector.broadcast %cst_5 : f32 to vector<8x128xf32>
    %10 = arith.mulf %6, %9 : vector<8x128xf32>
    %11 = arith.truncf %10 : vector<8x128xf32> to vector<8x128xbf16>
    %12 = arith.truncf %7 : vector<8x128xf32> to vector<8x128xbf16>
    %cst_6 = arith.constant dense<0.000000e+00> : vector<8x8xf32>
    %13 = tpu.matmul %11, %12, %cst_6 {dimension_numbers = #tpu.dot_dimension_numbers<[1], [1], [0], [0], [0, 0, 1, 0], [], []>} : vector<8x128xbf16>, vector<8x128xbf16>, vector<8x8xf32> -> vector<8x8xf32>
    %c0_7 = arith.constant 0 : index
    %c0_8 = arith.constant 0 : index
    %14 = vector.load %arg3[%c0_7, %c0_8] : memref<8x1xi32, #tpu.memory_space<vmem>>, vector<8x1xi32>
    %c0_9 = arith.constant 0 : index
    %15 = memref.load %arg4[%c0_9] : memref<1xi32, #tpu.memory_space<smem>>
    %16 = tpu.iota {dimensions = array<i32: 1>} : vector<8x8xi32>
    %17 = vector.broadcast %15 : i32 to vector<8x1xi32>
    %18 = arith.cmpi slt, %14, %17 : vector<8x1xi32>
    %19 = vector.broadcast %14 : vector<8x1xi32> to vector<8x8xi32>
    %20 = arith.cmpi sge, %16, %19 : vector<8x8xi32>
    %21 = vector.broadcast %18 : vector<8x1xi1> to vector<8x8xi1>
    %22 = arith.andi %21, %20 : vector<8x8xi1>
    %cst_10 = arith.constant -1.000000e+09 : f32
    %23 = vector.broadcast %cst_10 : f32 to vector<8x8xf32>
    %24 = arith.select %22, %23, %13 : vector<8x8xi1>, vector<8x8xf32>
    %cst_11 = arith.constant dense<0xFF800000> : vector<8xf32>
    %25 = vector.multi_reduction <maximumf>, %24, %cst_11 [1] : vector<8x8xf32> to vector<8xf32>
    %26 = vector.shape_cast %25 : vector<8xf32> to vector<8x1xf32>
    %27 = vector.broadcast %26 : vector<8x1xf32> to vector<8x8xf32>
    %28 = arith.subf %24, %27 : vector<8x8xf32>
    %29 = math.exp %28 : vector<8x8xf32>
    %cst_12 = arith.constant dense<0.000000e+00> : vector<8xf32>
    %30 = vector.multi_reduction <add>, %29, %cst_12 [1] : vector<8x8xf32> to vector<8xf32>
    %31 = vector.shape_cast %30 : vector<8xf32> to vector<8x1xf32>
    %32 = tpu.reciprocal %31 {approx = true} : vector<8x1xf32> -> vector<8x1xf32>
    %33 = vector.broadcast %32 : vector<8x1xf32> to vector<8x8xf32>
    %34 = arith.mulf %29, %33 : vector<8x8xf32>
    %35 = arith.truncf %34 : vector<8x8xf32> to vector<8x8xbf16>
    %36 = arith.truncf %8 : vector<8x128xf32> to vector<8x128xbf16>
    %cst_13 = arith.constant dense<0.000000e+00> : vector<8x128xf32>
    %37 = tpu.matmul %35, %36, %cst_13 {dimension_numbers = #tpu.dot_dimension_numbers<[1], [0], [0], [1], [0, 0, 1, 1], [], []>} : vector<8x8xbf16>, vector<8x128xbf16>, vector<8x128xf32> -> vector<8x128xf32>
    %c0_14 = arith.constant 0 : index
    %c0_15 = arith.constant 0 : index
    %38 = vector.load %arg5[%c0_14, %c0_15] : memref<8x128xf32, #tpu.memory_space<vmem>>, vector<8x128xf32>
    tpu.vector_store %arg5[%c0_14, %c0_15], %37 {strides = array<i32>} : memref<8x128xf32, #tpu.memory_space<vmem>>, vector<8x128xf32>,
    return
  }
}

</mosaic_0001>

<bundles_post_ra>
// kernel: self_attention.1
= control target key start
LH: loop header
LB: loop body
LE: loop exit
PB: predicated region body
PF: predicated region fallthrough
CT: control target
= control target key end

     0   :  { %v379_v2 = vmov 0   ;;  %s463_s0 = inlined_call_operand.vmem [shape: bf16[8,32], index: 0, kind: input, shape index: {}]   ;;  %s464_s1 = inlined_call_operand.vmem [shape: bf16[32,384], index: 1, kind: input, shape index: {}]   ;;  %s465_s2 = inlined_call_operand.vmem [shape: f32[1,384], index: 2, kind: input, shape index: {}]   ;;  %s466_s3 = inlined_call_operand.vmem [shape: s32[8,1], index: 3, kind: input, shape index: {}]   ;;  %s467_s4 = inlined_call_operand.<no memory space> [shape: s32[1], index: 4, kind: input, shape index: {}]   ;;  %s468_s5 = inlined_call_operand.hbm [shape: f32[8,128], index: 5, kind: output, shape index: {}]  }
   0x1   :  { %v343_v0 = vld [vmem:[%s464_s1 + $0x4] ss:$12 sps:$4 sm:$0xff]   ;;  %v345_v1 = vld [vmem:[%s464_s1] ss:$12 sps:$4 sm:$0xff]   ;;  %117 = vmatprep.mubr.bf16.mxu0 %v379_v2  ;;  %342 = vset.pattern.permute.xlu0 %v379_v2  ;;  %v346_v3 = vld [vmem:[%s464_s1 + $0x1c] ss:$12 sps:$4 sm:$0xff]  }
   0x2   :  { %85 = vmatprep.subr.bf16.mxu0 %v343_v0  ;;  %v348_v4 = vld [vmem:[%s464_s1 + $0x18] ss:$12 sps:$4 sm:$0xff]  }
   0x3   :  { %86 = vmatpush1.bf16.msra.mxu0 %v345_v1 }
   0x4   :  { %87 = vmatprep.subr.bf16.mxu0 %v346_v3 }
   0x5   :  { %11 = vsyncpa [#allocation4], 0  ;;  %v23_v5 = vld [vmem:[%s463_s0] sm:$0xf]  ;;  %vm81_vm0 = vcmask 261120   ;;  %v380_v6 = vmov 0.0   ;;  %v213_v8 = vstv %s467_s4  ;;  %v34_v10 = vlaneseq }
   0x6   :  { %318 = vmatprep.subr.bf16.mxu1 %v380_v6  ;;  %vm381_vm1 = vmmov 0   ;;  %v209_v7 = vld [vmem:[%s466_s3] sm:$0xff]  ;;  %v349_v26 = vld [vmem:[%s464_s1 + $0x8] ss:$12 sps:$4 sm:$0xff]   ;;  %vm226_vm5 = vcmask 64512   ;;  %vm243_vm7 = vcmask 1043456  }
   0x7   :  { %88 = vmatpush1.bf16.msra.mxu0 %v348_v4  ;;  %322 = vmatprep.mubr.msk.bf16.mxu1 %vm381_vm1, %v380_v6  ;;  %vm214_vm2 = vcmp.lt.s32.totalorder %v209_v7, %v213_v8  ;;  %v35_v11 = vshrl.u32 %v34_v10, 7  ;;  %v32_v13 = vld [vmem:[%s465_s2] sm:$0x7]  ;;  %v212_v29 = vand.u32 127, %v34_v10 }
   0x8   :  { %326 = vmatprep.subr.bf16.mxu0 %v380_v6  ;;  %216 = vperm.xlu0 %342, %v209_v7   ;;  %v219_v9 = vsel %vm214_vm2, 1, %v379_v2  ;;  %v350_v27 = vld [vmem:[%s464_s1 + $0x20] ss:$12 sps:$4 sm:$0xff]   ;;  %s382_s1 = smov [#allocation3]  }
   0x9   :  { %v40_v12 = vsub.s32 1, %v35_v11  ;;  %v36_v14 = vsub.s32 0, %v35_v11  ;;  %319 = vmatpush3.bf16.msra.mxu1 %v349_v26  ;;  %v44_v37 = vsub.s32 2, %v35_v11  ;;  %s294_s9 = sshll.u32 %s382_s1, 4  ;;  %s295_s9 = int_to_ptr.vmem [resolvable:$true] %s294_s9 }
   0xa   :  { %308 = vmatmul.mubr.msk.bf16.vlgmr.msra.gmra.mrb[0].mxu0 %vm81_vm0, %v23_v5  ;;  %320 = vmatprep.subr.bf16.mxu1 %v380_v6  ;;  %s355_s10 = scalar_lea.vmem %s295_s9, 128  ;;  %p360_p1 = scmp.lt.s32.totalorder %s295_s9, %s295_s9 }
   0xb   :  { %328 = vmatprep.mubr.msk.bf16.mxu0 %vm381_vm1, %v380_v6  ;;  %v41_v15 = vrot.slane %v32_v13, %v40_v12  ;;  %v37_v16 = vrot.slane %v32_v13, %v36_v14  ;;  %v45_v38 = vrot.slane %v32_v13, %v44_v37  ;;  %p356_p0 = scmp.ne.s32.totalorder %s295_s9, %s355_s10  ;;  %p361_p2 = scmp.lt.s32.totalorder %s355_s10, %s355_s10 }
   0xc   :  { %221 = vperm.xlu0 %342, %v219_v9  }
   0xd   :  { %321 = vmatpush3.bf16.msra.mxu1 %v350_v27  ;;  %p362_p3 = por %p361_p2, %p360_p1 }
   0xe   :  { %332 = vmatprep.subr.bf16.mxu1 %v380_v6 }
   0xf   :  { %p363_p4 = pnand %p362_p3, %p356_p0 }
  0x10   :  { %323 = vmatmul.mubr.msk.bf16.vlgmr.msra.gmra.mrb[0].mxu1 %vm81_vm0, %v23_v5 }
  0x11   :  { %334 = vmatprep.mubr.msk.bf16.mxu1 %vm381_vm1, %v380_v6 }
  0x87   :  { %v217_v28 = vpop.permute.xlu0 %216 }
  0x88   :  { %vm218_vm3 = vcmp.ge.s32.totalorder %v212_v29, %v217_v28 }
  0x8b   :  { %v222_v30 = vpop.permute.xlu0 %221 }
  0x8c   :  { %vm223_vm4 = vcmp.eq.s32.totalorder %v222_v30, 1 }
  0x8d   :  { %vm224_vm6 = vmand %vm223_vm4, %vm218_vm3 }
  0xdd   :  { %v119_v17 = vpop.f32.mrb[0].mxu0 }
  0xde   :  { %v121_v18 = vpop.f32.mrb[1].mxu0  ;;  %v120_v21 = vadd.f32 %v119_v17, %v37_v16 }
  0xdf   :  { %v122_v19 = vadd.f32 %v121_v18, %v41_v15  ;;  %v123_v20 = vpop.f32.mrb[2].mxu0 }
  0xe0   :  { %v124_v22 = vpop.f32.mrb[3].mxu0  ;;  %v166_v24 = vmul.f32 0.17677669, %v120_v21 }
  0xe1   :  { %v168_v23 = vpack.c.bf16 %v122_v19, %v122_v19 }
  0xe2   :  { %v167_v25 = vpack.c.bf16 %v166_v24, %v166_v24 }
  0xe3   :  { %327 = vmatpush3.bf16.xpose.msra.mxu0 %v168_v23  ;;  %v160_v39 = vpop.f32.mrb[0].mxu1 }
  0xe4   :  { %v161_v40 = vadd.f32 %v160_v39, %v45_v38  ;;  %v324_v41 = vpop.f32.mrb[1].mxu1 }
  0xe5   :  { %v163_v42 = vpop.f32.mrb[2].mxu1 }
  0xe6   :  { %v239_v43 = vpack.c.bf16 %v161_v40, %v161_v40  ;;  %v325_v44 = vpop.f32.mrb[3].mxu1 }
  0xe8   :  { %v245_v45 = vsel %vm243_vm7, %v239_v43, 0 }
  0xe9   :  { %333 = vmatpush3.bf16.msra.mxu1 %v245_v45 }
  0xea   :  { %329 = vmatmul.mubr.bf16.vlgmr.msra.gmra.mrb[4].mxu0 %v167_v25 }
 0x1bd   :  { %v203_v31 = vpop.f32.mrb[4].mxu0 }
 0x1be   :  { %v225_v32 = vsel %vm224_vm6, -1e+09, %v203_v31  ;;  %v330_v33 = vpop.f32.mrb[5].mxu0 }
 0x1bf   :  { %v206_v34 = vpop.f32.mrb[6].mxu0  ;;  %v227_v35 = vsel %vm226_vm5, %v225_v32, -inf }
 0x1c0   :  { %228 = vmax.xlane.f32.xlu1 %v227_v35  ;;  %v331_v36 = vpop.f32.mrb[7].mxu0 }
 0x24d   :  { %v229_v46 = vpop.xlane.xlu1 %228 }
 0x24e   :  { %v230_v47 = vsub.f32 %v225_v32, %v229_v46 }
 0x250   :  { %v231_v48 = vmul.f32 1.442695, %v230_v47 }
 0x252   :  { %351 = vpow2.f32 %v231_v48 }
 0x25c   :  { %v352_v49 = vpop.eup %351 }
 0x25d   :  { %v233_v50 = vsel %vm226_vm5, %v352_v49, 0.0 }
 0x25e   :  { %234 = vadd.xlane.f32.xlu1 %v233_v50 }
 0x2eb   :  { %v235_v51 = vpop.xlane.xlu1 %234 }
 0x2ec   :  { %353 = vrcp.f32 %v235_v51 }
 0x2f6   :  { %v354_v52 = vpop.eup %353 }
 0x2f7   :  { %v237_v53 = vmul.f32 %v354_v52, %v352_v49 }
 0x2f9   :  { %v238_v54 = vpack.c.bf16 %v237_v53, %v237_v53 }
 0x2fb   :  { %335 = vmatmul.mubr.msk.bf16.vlgmr.msra.gmra.mrb[4].mxu1 %vm226_vm5, %v238_v54 }
 0x3ce   :  { %v281_v55 = vpop.f32.mrb[4].mxu1 }
 0x3cf   :  { %287 = vst [vmem:[#allocation3] sm:$0xff] %v281_v55  ;;  %v336_v56 = vpop.f32.mrb[5].mxu1 }
 0x3d0   :  { %v284_v57 = vpop.f32.mrb[6].mxu1 }
 0x3d1   :  { %366 = shalt.err (!%p363_p4)
}
 0x3d2   :  { %s367_s13 = scalar_lea.hbm %s468_s5, 128 }
 0x3d3   :  { %p368_p5 = scmp.ne.s32.totalorder %s468_s5, %s367_s13  ;;  %p371_p6 = scmp.lt.u32.totalorder %s367_s13, %s468_s5 }
 0x3d5   :  { %p373_p7 = pnand %p371_p6, %p368_p5 }
 0x3d7   :  { %376 = shalt.err (!%p373_p7)
}
 0x3d8   :  { %297 = dma.vmem_to_hbm [thread:$0]  %s295_s9, 128, %s468_s5, [#allocation4]   ;;  %v337_v58 = vpop.f32.mrb[7].mxu1 }
 0x3d9   :  { %377 = dma.done.wait [#allocation4], 128  }
 0x3da   :  { %378 = vsyncadd [#allocation4], 4294967168 }
 0x3db   :  { %301 = vsyncpa [#allocation4], 1 }

</bundles_post_ra>
